<compile_context>
chip_gen: v6e
topology: v6e:2x2x1
jax: 0.10.0
libtpu: 0.0.40
codegen_flags: <defaults>
</compile_context>

<pallas_src>
import functools

import jax
import jax.numpy as jnp
from jax.experimental import pallas as pl
from jax.experimental.pallas import tpu as pltpu


def _upsample_kernel(x_ref, m_ref, b_ref, o_ref, *, c_in):
    """Fused 1x1-conv + PixelShuffle for one (batch, row-tile) block.

    x_ref: (1, C_in, TH, W)          VMEM input block
    m_ref: (C_in, C_in, W, r*r*W)    VMEM, resident (constant index_map)
    b_ref: (C_in, 1, r*r*W)          VMEM, resident (constant index_map)
    o_ref: (1, C_in, TH, r*r*W)      VMEM output block,
                                     lane index k = i*(r*W) + w*r + j
    """
    # TODO(synk): for large C_in switch these unrolled Python loops to
    # lax.fori_loop with dynamic ref indexing to bound trace/code size.
    for c in range(c_in):
        acc = jnp.dot(x_ref[0, 0].astype(jnp.float32), m_ref[c, 0],
                      preferred_element_type=jnp.float32)
        for cp in range(1, c_in):
            acc = acc + jnp.dot(x_ref[0, cp].astype(jnp.float32),
                                m_ref[c, cp],
                                preferred_element_type=jnp.float32)
        # Single full-width (lane-dense) store per output channel.
        o_ref[0, c] = (acc + b_ref[c]).astype(o_ref.dtype)


def _chip_cfg():
    """Per-generation block budget / VMEM limit / minimum parallel steps."""
    kind = ""
    try:
        kind = jax.devices()[0].device_kind.lower()
    except Exception:
        pass
    if "v5" in kind:
        # 128 MiB physical VMEM but only a 16 MiB default scoped limit ->
        # raise the limit explicitly; 1 TensorCore.
        return dict(block_budget=24 << 20, vmem_cap=96 << 20, min_steps=1)
    if "v7" in kind or "7x" in kind:
        # 64 MiB physical VMEM, ~3.2 TB/s HBM (bigger tiles amortize the
        # per-grid-step overhead), 2 TensorCores per chip.
        return dict(block_budget=24 << 20, vmem_cap=44 << 20, min_steps=2)
    # v6e / unknown: 128 MiB physical VMEM, room to grow tiles.
    return dict(block_budget=28 << 20, vmem_cap=64 << 20, min_steps=1)


def _pick_row_tile(N, H, W, C_in, r, itemsize, block_budget, min_steps):
    """Largest multiple-of-8 divisor of H whose DOUBLE-BUFFERED in+out blocks
    fit `block_budget` (keeps DMA chunks large since we pick the biggest
    fitting tile); optionally split further so the grid has >= min_steps
    parallel steps (keeps both v7x TensorCores busy)."""
    def step_bytes(t):
        in_blk = C_in * t * W * itemsize
        out_blk = C_in * t * W * r * r * itemsize
        return 2 * (in_blk + out_blk)          # x2: pipeline double-buffering

    cands = sorted((t for t in range(8, H + 1, 8) if H % t == 0), reverse=True)
    if not cands:
        return H                               # fallback: full-H block (legal)
    th = next((t for t in cands if step_bytes(t) <= block_budget), cands[-1])
    if N * (H // th) < min_steps:
        smaller = [t for t in cands if t < th]
        if smaller:
            th = smaller[0]
    return th


@functools.partial(jax.jit, static_argnames=("factor",))
def upsample_forward(x, weight, bias, factor=2):
    """UpSample.forward.

    x:      (N, C_in, H, W)                 NCHW, matches PyTorch
    weight: (C_in*factor**2, C_in)          1x1 conv kernel
    bias:   (C_in*factor**2,)
    returns (N, C_in, H*factor, W*factor)   NCHW, matches PyTorch
    """
    N, C_in, H, W = x.shape
    r = int(factor)
    rW, rrW = r * W, r * r * W

    cfg = _chip_cfg()
    TH = _pick_row_tile(N, H, W, C_in, r, x.dtype.itemsize,
                        cfg["block_budget"], cfg["min_steps"])
    n_row_tiles = H // TH

    # Conv + column-interleave matrix (resident in VMEM for the whole grid):
    #   M[c, cp, w, i*rW + w*r + j] = weight[c*r*r + i*r + j, cp]
    w4 = weight.reshape(C_in, r, r, C_in).astype(jnp.float32)   # [c, i, j, cp]
    eye_w = jnp.eye(W, dtype=jnp.float32)
    m_mat = jnp.einsum("cijp,wv->cpwivj", w4, eye_w).reshape(C_in, C_in, W, rrW)

    #   b_row[c, 0, i*rW + w*r + j] = bias[c*r*r + i*r + j]
    b_row = jnp.broadcast_to(
        bias.reshape(C_in, r, 1, r).astype(jnp.float32),
        (C_in, r, W, r)).reshape(C_in, 1, rrW)

    # Explicit VMEM accounting: double-buffered blocks + resident constants
    # + in-kernel temporaries, with 2x headroom, capped per generation.
    itemsize = x.dtype.itemsize
    step_bytes = 2 * (C_in * TH * W * itemsize + C_in * TH * rrW * itemsize)
    resident = m_mat.size * 4 + b_row.size * 4
    temps = 3 * TH * rrW * 4
    vmem_limit = int(min(cfg["vmem_cap"],
                         max(2 * (step_bytes + resident + temps), 32 << 20)))

    kernel = functools.partial(_upsample_kernel, c_in=C_in)

    out = pl.pallas_call(
        kernel,
        out_shape=jax.ShapeDtypeStruct((N, C_in, H, rrW), x.dtype),
        grid_spec=pltpu.PrefetchScalarGridSpec(
            num_scalar_prefetch=0,
            grid=(N, n_row_tiles),
            in_specs=[
                pl.BlockSpec((1, C_in, TH, W), lambda n, h: (n, 0, h, 0)),
                # Constant index_map -> DMA'd once, resident across the grid.
                pl.BlockSpec((C_in, C_in, W, rrW), lambda n, h: (0, 0, 0, 0)),
                pl.BlockSpec((C_in, 1, rrW), lambda n, h: (0, 0, 0)),
            ],
            out_specs=pl.BlockSpec((1, C_in, TH, rrW),
                                   lambda n, h: (n, 0, h, 0)),
        ),
        compiler_params=pltpu.CompilerParams(
            dimension_semantics=("parallel", "parallel"),
            vmem_limit_bytes=vmem_limit),
    )(x, m_mat, b_row)

    # Metadata-only reshape: lanes were written in k = i*(r*W) + w*r + j
    # order, so (N, C, H, r*r*W) == (N, C, H*r, W*r) without data movement.
    return out.reshape(N, C_in, H * r, W * r)


def _reference(x, weight, bias, factor=2):
    """Pure-JAX reference mirroring PyTorch Conv2d(1x1) + PixelShuffle."""
    N, C_in, H, W = x.shape
    r = factor
    y = jnp.einsum("oc,nchw->nohw", weight, x) + bias[None, :, None, None]
    y = y.reshape(N, C_in, r, r, H, W)
    y = jnp.transpose(y, (0, 1, 4, 2, 5, 3))
    return y.reshape(N, C_in, H * r, W * r)


def _run_case(key, N, C_in, H, W, factor):
    k_x, k_w, k_b = jax.random.split(key, 3)
    C_out = C_in * factor * factor

    x = jax.random.normal(k_x, (N, C_in, H, W), dtype=jnp.float32)

    # xavier_normal_ on the Conv2d weight: std = sqrt(2 / (fan_in + fan_out))
    std = (2.0 / (C_in + C_out)) ** 0.5
    weight = std * jax.random.normal(k_w, (C_out, C_in), dtype=jnp.float32)
    # PyTorch Conv2d default bias init: U(-1/sqrt(fan_in), 1/sqrt(fan_in))
    bound = 1.0 / (C_in ** 0.5)
    bias = jax.random.uniform(
        k_b, (C_out,), minval=-bound, maxval=bound, dtype=jnp.float32)

    out = jax.block_until_ready(upsample_forward(x, weight, bias,
                                                 factor=factor))
    ref = _reference(x, weight, bias, factor=factor)
    assert out.shape == (N, C_in, H * factor, W * factor), out.shape
    assert jnp.allclose(out, ref, atol=1e-5, rtol=1e-5), \
        f"mismatch vs reference for shape {(N, C_in, H, W)}"


if __name__ == "__main__":
    key = jax.random.PRNGKey(0)
    k1, k2 = jax.random.split(key)

    # Primary case (module-consistent small shapes).
    _run_case(k1, N=2, C_in=4, H=16, W=16, factor=2)
    # Odd / non-8-divisible spatial shape exercises the TH = H fallback path.
    _run_case(k2, N=1, C_in=3, H=10, W=12, factor=2)

    print("KERNEL_OK")
</pallas_src>

<mosaic_0001>
module attributes {stable_mosaic.version = 11 : i64} {
  func.func @_upsample_kernel(%arg0: i32, %arg1: i32, %arg2: memref<1x4x16x16xf32, #tpu.memory_space<vmem>>, %arg3: memref<4x4x16x64xf32, #tpu.memory_space<vmem>>, %arg4: memref<4x1x64xf32, #tpu.memory_space<vmem>>, %arg5: memref<1x4x16x64xf32, #tpu.memory_space<vmem>>) attributes {dimension_semantics = [#tpu.dimension_semantics<parallel>, #tpu.dimension_semantics<parallel>], iteration_bounds = array<i64: 2, 1>, scalar_prefetch = 0 : i64, scratch_operands = 0 : i64, tpu.core_type = #tpu.core_type<tc>, window_params = [{transform_indices = @transform_0, window_bounds = array<i64: 1, 4, 16, 16>}, {pipeline_mode = #tpu.pipeline_mode<synchronous>, transform_indices = @transform_1, window_bounds = array<i64: 4, 4, 16, 64>}, {pipeline_mode = #tpu.pipeline_mode<synchronous>, transform_indices = @transform_2, window_bounds = array<i64: 4, 1, 64>}, {transform_indices = @transform_3, window_bounds = array<i64: 1, 4, 16, 64>}]} {
    %c0 = arith.constant 0 : index
    %c0_0 = arith.constant 0 : index
    %c0_1 = arith.constant 0 : index
    %c0_2 = arith.constant 0 : index
    %0 = vector.load %arg2[%c0, %c0_0, %c0_1, %c0_2] : memref<1x4x16x16xf32, #tpu.memory_space<vmem>>, vector<1x1x16x16xf32>
    %1 = vector.shape_cast %0 : vector<1x1x16x16xf32> to vector<16x16xf32>
    %c0_3 = arith.constant 0 : index
    %c0_4 = arith.constant 0 : index
    %c0_5 = arith.constant 0 : index
    %c0_6 = arith.constant 0 : index
    %2 = vector.load %arg3[%c0_3, %c0_4, %c0_5, %c0_6] : memref<4x4x16x64xf32, #tpu.memory_space<vmem>>, vector<1x1x16x64xf32>
    %3 = vector.shape_cast %2 : vector<1x1x16x64xf32> to vector<16x64xf32>
    %cst = arith.constant dense<0.000000e+00> : vector<16x64xf32>
    %4 = tpu.matmul %1, %3, %cst {dimension_numbers = #tpu.dot_dimension_numbers<[1], [0], [0], [1], [0, 0, 1, 1], [], []>} : vector<16x16xf32>, vector<16x64xf32>, vector<16x64xf32> -> vector<16x64xf32>
    %c0_7 = arith.constant 0 : index
    %c1 = arith.constant 1 : index
    %c0_8 = arith.constant 0 : index
    %c0_9 = arith.constant 0 : index
    %5 = vector.load %arg2[%c0_7, %c1, %c0_8, %c0_9] : memref<1x4x16x16xf32, #tpu.memory_space<vmem>>, vector<1x1x16x16xf32>
    %6 = vector.shape_cast %5 : vector<1x1x16x16xf32> to vector<16x16xf32>
    %c0_10 = arith.constant 0 : index
    %c1_11 = arith.constant 1 : index
    %c0_12 = arith.constant 0 : index
    %c0_13 = arith.constant 0 : index
    %7 = vector.load %arg3[%c0_10, %c1_11, %c0_12, %c0_13] : memref<4x4x16x64xf32, #tpu.memory_space<vmem>>, vector<1x1x16x64xf32>
    %8 = vector.shape_cast %7 : vector<1x1x16x64xf32> to vector<16x64xf32>
    %cst_14 = arith.constant dense<0.000000e+00> : vector<16x64xf32>
    %9 = tpu.matmul %6, %8, %cst_14 {dimension_numbers = #tpu.dot_dimension_numbers<[1], [0], [0], [1], [0, 0, 1, 1], [], []>} : vector<16x16xf32>, vector<16x64xf32>, vector<16x64xf32> -> vector<16x64xf32>
    %10 = arith.addf %4, %9 : vector<16x64xf32>
    %c0_15 = arith.constant 0 : index
    %c2 = arith.constant 2 : index
    %c0_16 = arith.constant 0 : index
    %c0_17 = arith.constant 0 : index
    %11 = vector.load %arg2[%c0_15, %c2, %c0_16, %c0_17] : memref<1x4x16x16xf32, #tpu.memory_space<vmem>>, vector<1x1x16x16xf32>
    %12 = vector.shape_cast %11 : vector<1x1x16x16xf32> to vector<16x16xf32>
    %c0_18 = arith.constant 0 : index
    %c2_19 = arith.constant 2 : index
    %c0_20 = arith.constant 0 : index
    %c0_21 = arith.constant 0 : index
    %13 = vector.load %arg3[%c0_18, %c2_19, %c0_20, %c0_21] : memref<4x4x16x64xf32, #tpu.memory_space<vmem>>, vector<1x1x16x64xf32>
    %14 = vector.shape_cast %13 : vector<1x1x16x64xf32> to vector<16x64xf32>
    %cst_22 = arith.constant dense<0.000000e+00> : vector<16x64xf32>
    %15 = tpu.matmul %12, %14, %cst_22 {dimension_numbers = #tpu.dot_dimension_numbers<[1], [0], [0], [1], [0, 0, 1, 1], [], []>} : vector<16x16xf32>, vector<16x64xf32>, vector<16x64xf32> -> vector<16x64xf32>
    %16 = arith.addf %10, %15 : vector<16x64xf32>
    %c0_23 = arith.constant 0 : index
    %c3 = arith.constant 3 : index
    %c0_24 = arith.constant 0 : index
    %c0_25 = arith.constant 0 : index
    %17 = vector.load %arg2[%c0_23, %c3, %c0_24, %c0_25] : memref<1x4x16x16xf32, #tpu.memory_space<vmem>>, vector<1x1x16x16xf32>
    %18 = vector.shape_cast %17 : vector<1x1x16x16xf32> to vector<16x16xf32>
    %c0_26 = arith.constant 0 : index
    %c3_27 = arith.constant 3 : index
    %c0_28 = arith.constant 0 : index
    %c0_29 = arith.constant 0 : index
    %19 = vector.load %arg3[%c0_26, %c3_27, %c0_28, %c0_29] : memref<4x4x16x64xf32, #tpu.memory_space<vmem>>, vector<1x1x16x64xf32>
    %20 = vector.shape_cast %19 : vector<1x1x16x64xf32> to vector<16x64xf32>
    %cst_30 = arith.constant dense<0.000000e+00> : vector<16x64xf32>
    %21 = tpu.matmul %18, %20, %cst_30 {dimension_numbers = #tpu.dot_dimension_numbers<[1], [0], [0], [1], [0, 0, 1, 1], [], []>} : vector<16x16xf32>, vector<16x64xf32>, vector<16x64xf32> -> vector<16x64xf32>
    %22 = arith.addf %16, %21 : vector<16x64xf32>
    %c0_31 = arith.constant 0 : index
    %c0_32 = arith.constant 0 : index
    %c0_33 = arith.constant 0 : index
    %23 = vector.load %arg4[%c0_31, %c0_32, %c0_33] : memref<4x1x64xf32, #tpu.memory_space<vmem>>, vector<1x1x64xf32>
    %24 = vector.shape_cast %23 : vector<1x1x64xf32> to vector<1x64xf32>
    %25 = vector.broadcast %24 : vector<1x64xf32> to vector<16x64xf32>
    %26 = arith.addf %22, %25 : vector<16x64xf32>
    %c0_34 = arith.constant 0 : index
    %c0_35 = arith.constant 0 : index
    %c0_36 = arith.constant 0 : index
    %c0_37 = arith.constant 0 : index
    %27 = vector.load %arg5[%c0_34, %c0_35, %c0_36, %c0_37] : memref<1x4x16x64xf32, #tpu.memory_space<vmem>>, vector<1x1x16x64xf32>
    %28 = vector.shape_cast %27 : vector<1x1x16x64xf32> to vector<16x64xf32>
    %29 = vector.shape_cast %26 : vector<16x64xf32> to vector<1x1x16x64xf32>
    tpu.vector_store %arg5[%c0_34, %c0_35, %c0_36, %c0_37], %29 {strides = array<i32>} : memref<1x4x16x64xf32, #tpu.memory_space<vmem>>, vector<1x1x16x64xf32>,
    %c0_38 = arith.constant 0 : index
    %c0_39 = arith.constant 0 : index
    %c0_40 = arith.constant 0 : index
    %c0_41 = arith.constant 0 : index
    %30 = vector.load %arg2[%c0_38, %c0_39, %c0_40, %c0_41] : memref<1x4x16x16xf32, #tpu.memory_space<vmem>>, vector<1x1x16x16xf32>
    %31 = vector.shape_cast %30 : vector<1x1x16x16xf32> to vector<16x16xf32>
    %c1_42 = arith.constant 1 : index
    %c0_43 = arith.constant 0 : index
    %c0_44 = arith.constant 0 : index
    %c0_45 = arith.constant 0 : index
    %32 = vector.load %arg3[%c1_42, %c0_43, %c0_44, %c0_45] : memref<4x4x16x64xf32, #tpu.memory_space<vmem>>, vector<1x1x16x64xf32>
    %33 = vector.shape_cast %32 : vector<1x1x16x64xf32> to vector<16x64xf32>
    %cst_46 = arith.constant dense<0.000000e+00> : vector<16x64xf32>
    %34 = tpu.matmul %31, %33, %cst_46 {dimension_numbers = #tpu.dot_dimension_numbers<[1], [0], [0], [1], [0, 0, 1, 1], [], []>} : vector<16x16xf32>, vector<16x64xf32>, vector<16x64xf32> -> vector<16x64xf32>
    %c0_47 = arith.constant 0 : index
    %c1_48 = arith.constant 1 : index
    %c0_49 = arith.constant 0 : index
    %c0_50 = arith.constant 0 : index
    %35 = vector.load %arg2[%c0_47, %c1_48, %c0_49, %c0_50] : memref<1x4x16x16xf32, #tpu.memory_space<vmem>>, vector<1x1x16x16xf32>
    %36 = vector.shape_cast %35 : vector<1x1x16x16xf32> to vector<16x16xf32>
    %c1_51 = arith.constant 1 : index
    %c1_52 = arith.constant 1 : index
    %c0_53 = arith.constant 0 : index
    %c0_54 = arith.constant 0 : index
    %37 = vector.load %arg3[%c1_51, %c1_52, %c0_53, %c0_54] : memref<4x4x16x64xf32, #tpu.memory_space<vmem>>, vector<1x1x16x64xf32>
    %38 = vector.shape_cast %37 : vector<1x1x16x64xf32> to vector<16x64xf32>
    %cst_55 = arith.constant dense<0.000000e+00> : vector<16x64xf32>
    %39 = tpu.matmul %36, %38, %cst_55 {dimension_numbers = #tpu.dot_dimension_numbers<[1], [0], [0], [1], [0, 0, 1, 1], [], []>} : vector<16x16xf32>, vector<16x64xf32>, vector<16x64xf32> -> vector<16x64xf32>
    %40 = arith.addf %34, %39 : vector<16x64xf32>
    %c0_56 = arith.constant 0 : index
    %c2_57 = arith.constant 2 : index
    %c0_58 = arith.constant 0 : index
    %c0_59 = arith.constant 0 : index
    %41 = vector.load %arg2[%c0_56, %c2_57, %c0_58, %c0_59] : memref<1x4x16x16xf32, #tpu.memory_space<vmem>>, vector<1x1x16x16xf32>
    %42 = vector.shape_cast %41 : vector<1x1x16x16xf32> to vector<16x16xf32>
    %c1_60 = arith.constant 1 : index
    %c2_61 = arith.constant 2 : index
    %c0_62 = arith.constant 0 : index
    %c0_63 = arith.constant 0 : index
    %43 = vector.load %arg3[%c1_60, %c2_61, %c0_62, %c0_63] : memref<4x4x16x64xf32, #tpu.memory_space<vmem>>, vector<1x1x16x64xf32>
    %44 = vector.shape_cast %43 : vector<1x1x16x64xf32> to vector<16x64xf32>
    %cst_64 = arith.constant dense<0.000000e+00> : vector<16x64xf32>
    %45 = tpu.matmul %42, %44, %cst_64 {dimension_numbers = #tpu.dot_dimension_numbers<[1], [0], [0], [1], [0, 0, 1, 1], [], []>} : vector<16x16xf32>, vector<16x64xf32>, vector<16x64xf32> -> vector<16x64xf32>
    %46 = arith.addf %40, %45 : vector<16x64xf32>
    %c0_65 = arith.constant 0 : index
    %c3_66 = arith.constant 3 : index
    %c0_67 = arith.constant 0 : index
    %c0_68 = arith.constant 0 : index
    %47 = vector.load %arg2[%c0_65, %c3_66, %c0_67, %c0_68] : memref<1x4x16x16xf32, #tpu.memory_space<vmem>>, vector<1x1x16x16xf32>
    %48 = vector.shape_cast %47 : vector<1x1x16x16xf32> to vector<16x16xf32>
    %c1_69 = arith.constant 1 : index
    %c3_70 = arith.constant 3 : index
    %c0_71 = arith.constant 0 : index
    %c0_72 = arith.constant 0 : index
    %49 = vector.load %arg3[%c1_69, %c3_70, %c0_71, %c0_72] : memref<4x4x16x64xf32, #tpu.memory_space<vmem>>, vector<1x1x16x64xf32>
    %50 = vector.shape_cast %49 : vector<1x1x16x64xf32> to vector<16x64xf32>
    %cst_73 = arith.constant dense<0.000000e+00> : vector<16x64xf32>
    %51 = tpu.matmul %48, %50, %cst_73 {dimension_numbers = #tpu.dot_dimension_numbers<[1], [0], [0], [1], [0, 0, 1, 1], [], []>} : vector<16x16xf32>, vector<16x64xf32>, vector<16x64xf32> -> vector<16x64xf32>
    %52 = arith.addf %46, %51 : vector<16x64xf32>
    %c1_74 = arith.constant 1 : index
    %c0_75 = arith.constant 0 : index
    %c0_76 = arith.constant 0 : index
    %53 = vector.load %arg4[%c1_74, %c0_75, %c0_76] : memref<4x1x64xf32, #tpu.memory_space<vmem>>, vector<1x1x64xf32>
    %54 = vector.shape_cast %53 : vector<1x1x64xf32> to vector<1x64xf32>
    %55 = vector.broadcast %54 : vector<1x64xf32> to vector<16x64xf32>
    %56 = arith.addf %52, %55 : vector<16x64xf32>
    %c0_77 = arith.constant 0 : index
    %c1_78 = arith.constant 1 : index
    %c0_79 = arith.constant 0 : index
    %c0_80 = arith.constant 0 : index
    %57 = vector.load %arg5[%c0_77, %c1_78, %c0_79, %c0_80] : memref<1x4x16x64xf32, #tpu.memory_space<vmem>>, vector<1x1x16x64xf32>
    %58 = vector.shape_cast %57 : vector<1x1x16x64xf32> to vector<16x64xf32>
    %59 = vector.shape_cast %56 : vector<16x64xf32> to vector<1x1x16x64xf32>
    tpu.vector_store %arg5[%c0_77, %c1_78, %c0_79, %c0_80], %59 {strides = array<i32>} : memref<1x4x16x64xf32, #tpu.memory_space<vmem>>, vector<1x1x16x64xf32>,
    %c0_81 = arith.constant 0 : index
    %c0_82 = arith.constant 0 : index
    %c0_83 = arith.constant 0 : index
    %c0_84 = arith.constant 0 : index
    %60 = vector.load %arg2[%c0_81, %c0_82, %c0_83, %c0_84] : memref<1x4x16x16xf32, #tpu.memory_space<vmem>>, vector<1x1x16x16xf32>
    %61 = vector.shape_cast %60 : vector<1x1x16x16xf32> to vector<16x16xf32>
    %c2_85 = arith.constant 2 : index
    %c0_86 = arith.constant 0 : index
    %c0_87 = arith.constant 0 : index
    %c0_88 = arith.constant 0 : index
    %62 = vector.load %arg3[%c2_85, %c0_86, %c0_87, %c0_88] : memref<4x4x16x64xf32, #tpu.memory_space<vmem>>, vector<1x1x16x64xf32>
    %63 = vector.shape_cast %62 : vector<1x1x16x64xf32> to vector<16x64xf32>
    %cst_89 = arith.constant dense<0.000000e+00> : vector<16x64xf32>
    %64 = tpu.matmul %61, %63, %cst_89 {dimension_numbers = #tpu.dot_dimension_numbers<[1], [0], [0], [1], [0, 0, 1, 1], [], []>} : vector<16x16xf32>, vector<16x64xf32>, vector<16x64xf32> -> vector<16x64xf32>
    %c0_90 = arith.constant 0 : index
    %c1_91 = arith.constant 1 : index
    %c0_92 = arith.constant 0 : index
    %c0_93 = arith.constant 0 : index
    %65 = vector.load %arg2[%c0_90, %c1_91, %c0_92, %c0_93] : memref<1x4x16x16xf32, #tpu.memory_space<vmem>>, vector<1x1x16x16xf32>
    %66 = vector.shape_cast %65 : vector<1x1x16x16xf32> to vector<16x16xf32>
    %c2_94 = arith.constant 2 : index
    %c1_95 = arith.constant 1 : index
    %c0_96 = arith.constant 0 : index
    %c0_97 = arith.constant 0 : index
    %67 = vector.load %arg3[%c2_94, %c1_95, %c0_96, %c0_97] : memref<4x4x16x64xf32, #tpu.memory_space<vmem>>, vector<1x1x16x64xf32>
    %68 = vector.shape_cast %67 : vector<1x1x16x64xf32> to vector<16x64xf32>
    %cst_98 = arith.constant dense<0.000000e+00> : vector<16x64xf32>
    %69 = tpu.matmul %66, %68, %cst_98 {dimension_numbers = #tpu.dot_dimension_numbers<[1], [0], [0], [1], [0, 0, 1, 1], [], []>} : vector<16x16xf32>, vector<16x64xf32>, vector<16x64xf32> -> vector<16x64xf32>
    %70 = arith.addf %64, %69 : vector<16x64xf32>
    %c0_99 = arith.constant 0 : index
    %c2_100 = arith.constant 2 : index
    %c0_101 = arith.constant 0 : index
    %c0_102 = arith.constant 0 : index
    %71 = vector.load %arg2[%c0_99, %c2_100, %c0_101, %c0_102] : memref<1x4x16x16xf32, #tpu.memory_space<vmem>>, vector<1x1x16x16xf32>
    %72 = vector.shape_cast %71 : vector<1x1x16x16xf32> to vector<16x16xf32>
    %c2_103 = arith.constant 2 : index
    %c2_104 = arith.constant 2 : index
    %c0_105 = arith.constant 0 : index
    %c0_106 = arith.constant 0 : index
    %73 = vector.load %arg3[%c2_103, %c2_104, %c0_105, %c0_106] : memref<4x4x16x64xf32, #tpu.memory_space<vmem>>, vector<1x1x16x64xf32>
    %74 = vector.shape_cast %73 : vector<1x1x16x64xf32> to vector<16x64xf32>
    %cst_107 = arith.constant dense<0.000000e+00> : vector<16x64xf32>
    %75 = tpu.matmul %72, %74, %cst_107 {dimension_numbers = #tpu.dot_dimension_numbers<[1], [0], [0], [1], [0, 0, 1, 1], [], []>} : vector<16x16xf32>, vector<16x64xf32>, vector<16x64xf32> -> vector<16x64xf32>
    %76 = arith.addf %70, %75 : vector<16x64xf32>
    %c0_108 = arith.constant 0 : index
    %c3_109 = arith.constant 3 : index
    %c0_110 = arith.constant 0 : index
    %c0_111 = arith.constant 0 : index
    %77 = vector.load %arg2[%c0_108, %c3_109, %c0_110, %c0_111] : memref<1x4x16x16xf32, #tpu.memory_space<vmem>>, vector<1x1x16x16xf32>
    %78 = vector.shape_cast %77 : vector<1x1x16x16xf32> to vector<16x16xf32>
    %c2_112 = arith.constant 2 : index
    %c3_113 = arith.constant 3 : index
    %c0_114 = arith.constant 0 : index
    %c0_115 = arith.constant 0 : index
    %79 = vector.load %arg3[%c2_112, %c3_113, %c0_114, %c0_115] : memref<4x4x16x64xf32, #tpu.memory_space<vmem>>, vector<1x1x16x64xf32>
    %80 = vector.shape_cast %79 : vector<1x1x16x64xf32> to vector<16x64xf32>
    %cst_116 = arith.constant dense<0.000000e+00> : vector<16x64xf32>
    %81 = tpu.matmul %78, %80, %cst_116 {dimension_numbers = #tpu.dot_dimension_numbers<[1], [0], [0], [1], [0, 0, 1, 1], [], []>} : vector<16x16xf32>, vector<16x64xf32>, vector<16x64xf32> -> vector<16x64xf32>
    %82 = arith.addf %76, %81 : vector<16x64xf32>
    %c2_117 = arith.constant 2 : index
    %c0_118 = arith.constant 0 : index
    %c0_119 = arith.constant 0 : index
    %83 = vector.load %arg4[%c2_117, %c0_118, %c0_119] : memref<4x1x64xf32, #tpu.memory_space<vmem>>, vector<1x1x64xf32>
    %84 = vector.shape_cast %83 : vector<1x1x64xf32> to vector<1x64xf32>
    %85 = vector.broadcast %84 : vector<1x64xf32> to vector<16x64xf32>
    %86 = arith.addf %82, %85 : vector<16x64xf32>
    %c0_120 = arith.constant 0 : index
    %c2_121 = arith.constant 2 : index
    %c0_122 = arith.constant 0 : index
    %c0_123 = arith.constant 0 : index
    %87 = vector.load %arg5[%c0_120, %c2_121, %c0_122, %c0_123] : memref<1x4x16x64xf32, #tpu.memory_space<vmem>>, vector<1x1x16x64xf32>
    %88 = vector.shape_cast %87 : vector<1x1x16x64xf32> to vector<16x64xf32>
    %89 = vector.shape_cast %86 : vector<16x64xf32> to vector<1x1x16x64xf32>
    tpu.vector_store %arg5[%c0_120, %c2_121, %c0_122, %c0_123], %89 {strides = array<i32>} : memref<1x4x16x64xf32, #tpu.memory_space<vmem>>, vector<1x1x16x64xf32>,
    %c0_124 = arith.constant 0 : index
    %c0_125 = arith.constant 0 : index
    %c0_126 = arith.constant 0 : index
    %c0_127 = arith.constant 0 : index
    %90 = vector.load %arg2[%c0_124, %c0_125, %c0_126, %c0_127] : memref<1x4x16x16xf32, #tpu.memory_space<vmem>>, vector<1x1x16x16xf32>
    %91 = vector.shape_cast %90 : vector<1x1x16x16xf32> to vector<16x16xf32>
    %c3_128 = arith.constant 3 : index
    %c0_129 = arith.constant 0 : index
    %c0_130 = arith.constant 0 : index
    %c0_131 = arith.constant 0 : index
    %92 = vector.load %arg3[%c3_128, %c0_129, %c0_130, %c0_131] : memref<4x4x16x64xf32, #tpu.memory_space<vmem>>, vector<1x1x16x64xf32>
    %93 = vector.shape_cast %92 : vector<1x1x16x64xf32> to vector<16x64xf32>
    %cst_132 = arith.constant dense<0.000000e+00> : vector<16x64xf32>
    %94 = tpu.matmul %91, %93, %cst_132 {dimension_numbers = #tpu.dot_dimension_numbers<[1], [0], [0], [1], [0, 0, 1, 1], [], []>} : vector<16x16xf32>, vector<16x64xf32>, vector<16x64xf32> -> vector<16x64xf32>
    %c0_133 = arith.constant 0 : index
    %c1_134 = arith.constant 1 : index
    %c0_135 = arith.constant 0 : index
    %c0_136 = arith.constant 0 : index
    %95 = vector.load %arg2[%c0_133, %c1_134, %c0_135, %c0_136] : memref<1x4x16x16xf32, #tpu.memory_space<vmem>>, vector<1x1x16x16xf32>
    %96 = vector.shape_cast %95 : vector<1x1x16x16xf32> to vector<16x16xf32>
    %c3_137 = arith.constant 3 : index
    %c1_138 = arith.constant 1 : index
    %c0_139 = arith.constant 0 : index
    %c0_140 = arith.constant 0 : index
    %97 = vector.load %arg3[%c3_137, %c1_138, %c0_139, %c0_140] : memref<4x4x16x64xf32, #tpu.memory_space<vmem>>, vector<1x1x16x64xf32>
    %98 = vector.shape_cast %97 : vector<1x1x16x64xf32> to vector<16x64xf32>
    %cst_141 = arith.constant dense<0.000000e+00> : vector<16x64xf32>
    %99 = tpu.matmul %96, %98, %cst_141 {dimension_numbers = #tpu.dot_dimension_numbers<[1], [0], [0], [1], [0, 0, 1, 1], [], []>} : vector<16x16xf32>, vector<16x64xf32>, vector<16x64xf32> -> vector<16x64xf32>
    %100 = arith.addf %94, %99 : vector<16x64xf32>
    %c0_142 = arith.constant 0 : index
    %c2_143 = arith.constant 2 : index
    %c0_144 = arith.constant 0 : index
    %c0_145 = arith.constant 0 : index
    %101 = vector.load %arg2[%c0_142, %c2_143, %c0_144, %c0_145] : memref<1x4x16x16xf32, #tpu.memory_space<vmem>>, vector<1x1x16x16xf32>
    %102 = vector.shape_cast %101 : vector<1x1x16x16xf32> to vector<16x16xf32>
    %c3_146 = arith.constant 3 : index
    %c2_147 = arith.constant 2 : index
    %c0_148 = arith.constant 0 : index
    %c0_149 = arith.constant 0 : index
    %103 = vector.load %arg3[%c3_146, %c2_147, %c0_148, %c0_149] : memref<4x4x16x64xf32, #tpu.memory_space<vmem>>, vector<1x1x16x64xf32>
    %104 = vector.shape_cast %103 : vector<1x1x16x64xf32> to vector<16x64xf32>
    %cst_150 = arith.constant dense<0.000000e+00> : vector<16x64xf32>
    %105 = tpu.matmul %102, %104, %cst_150 {dimension_numbers = #tpu.dot_dimension_numbers<[1], [0], [0], [1], [0, 0, 1, 1], [], []>} : vector<16x16xf32>, vector<16x64xf32>, vector<16x64xf32> -> vector<16x64xf32>
    %106 = arith.addf %100, %105 : vector<16x64xf32>
    %c0_151 = arith.constant 0 : index
    %c3_152 = arith.constant 3 : index
    %c0_153 = arith.constant 0 : index
    %c0_154 = arith.constant 0 : index
    %107 = vector.load %arg2[%c0_151, %c3_152, %c0_153, %c0_154] : memref<1x4x16x16xf32, #tpu.memory_space<vmem>>, vector<1x1x16x16xf32>
    %108 = vector.shape_cast %107 : vector<1x1x16x16xf32> to vector<16x16xf32>
    %c3_155 = arith.constant 3 : index
    %c3_156 = arith.constant 3 : index
    %c0_157 = arith.constant 0 : index
    %c0_158 = arith.constant 0 : index
    %109 = vector.load %arg3[%c3_155, %c3_156, %c0_157, %c0_158] : memref<4x4x16x64xf32, #tpu.memory_space<vmem>>, vector<1x1x16x64xf32>
    %110 = vector.shape_cast %109 : vector<1x1x16x64xf32> to vector<16x64xf32>
    %cst_159 = arith.constant dense<0.000000e+00> : vector<16x64xf32>
    %111 = tpu.matmul %108, %110, %cst_159 {dimension_numbers = #tpu.dot_dimension_numbers<[1], [0], [0], [1], [0, 0, 1, 1], [], []>} : vector<16x16xf32>, vector<16x64xf32>, vector<16x64xf32> -> vector<16x64xf32>
    %112 = arith.addf %106, %111 : vector<16x64xf32>
    %c3_160 = arith.constant 3 : index
    %c0_161 = arith.constant 0 : index
    %c0_162 = arith.constant 0 : index
    %113 = vector.load %arg4[%c3_160, %c0_161, %c0_162] : memref<4x1x64xf32, #tpu.memory_space<vmem>>, vector<1x1x64xf32>
    %114 = vector.shape_cast %113 : vector<1x1x64xf32> to vector<1x64xf32>
    %115 = vector.broadcast %114 : vector<1x64xf32> to vector<16x64xf32>
    %116 = arith.addf %112, %115 : vector<16x64xf32>
    %c0_163 = arith.constant 0 : index
    %c3_164 = arith.constant 3 : index
    %c0_165 = arith.constant 0 : index
    %c0_166 = arith.constant 0 : index
    %117 = vector.load %arg5[%c0_163, %c3_164, %c0_165, %c0_166] : memref<1x4x16x64xf32, #tpu.memory_space<vmem>>, vector<1x1x16x64xf32>
    %118 = vector.shape_cast %117 : vector<1x1x16x64xf32> to vector<16x64xf32>
    %119 = vector.shape_cast %116 : vector<16x64xf32> to vector<1x1x16x64xf32>
    tpu.vector_store %arg5[%c0_163, %c3_164, %c0_165, %c0_166], %119 {strides = array<i32>} : memref<1x4x16x64xf32, #tpu.memory_space<vmem>>, vector<1x1x16x64xf32>,
    return
  }
  func.func @transform_0(%arg0: i32, %arg1: i32) -> (i32, i32, i32, i32) {
    %c0_i32 = arith.constant 0 : i32
    %c0_i32_0 = arith.constant 0 : i32
    %c0_i32_1 = arith.constant 0 : i32
    return %arg0, %c0_i32, %arg1, %c0_i32_0 : i32, i32, i32, i32
  }
  func.func @transform_1(%arg0: i32, %arg1: i32) -> (i32, i32, i32, i32) {
    %c0_i32 = arith.constant 0 : i32
    %c0_i32_0 = arith.constant 0 : i32
    %c0_i32_1 = arith.constant 0 : i32
    %c0_i32_2 = arith.constant 0 : i32
    %c0_i32_3 = arith.constant 0 : i32
    return %c0_i32, %c0_i32_0, %c0_i32_1, %c0_i32_2 : i32, i32, i32, i32
  }
  func.func @transform_2(%arg0: i32, %arg1: i32) -> (i32, i32, i32) {
    %c0_i32 = arith.constant 0 : i32
    %c0_i32_0 = arith.constant 0 : i32
    %c0_i32_1 = arith.constant 0 : i32
    %c0_i32_2 = arith.constant 0 : i32
    return %c0_i32, %c0_i32_0, %c0_i32_1 : i32, i32, i32
  }
  func.func @transform_3(%arg0: i32, %arg1: i32) -> (i32, i32, i32, i32) {
    %c0_i32 = arith.constant 0 : i32
    %c0_i32_0 = arith.constant 0 : i32
    %c0_i32_1 = arith.constant 0 : i32
    return %arg0, %c0_i32, %arg1, %c0_i32_0 : i32, i32, i32, i32
  }
}

</mosaic_0001>

<bundles_post_ra>
// kernel: upsample_forward.1
= control target key start
LH: loop header
LB: loop body
LE: loop exit
PB: predicated region body
PF: predicated region fallthrough
CT: control target
= control target key end

     0   :  { %s2099_s12 = smov 0   ;;  %s2101_s13 = smov 0   ;;  %s2345_s0 = inlined_call_operand.vmem [shape: f32[2,4,16,16], index: 0, kind: input, shape index: {}]   ;;  %s2346_s1 = inlined_call_operand.vmem [shape: f32[4,4,16,64], index: 1, kind: input, shape index: {}]   ;;  %s2347_s2 = inlined_call_operand.vmem [shape: f32[4,1,64], index: 2, kind: input, shape index: {}]   ;;  %s2348_s3 = inlined_call_operand.vmem [shape: f32[2,4,16,64], index: 3, kind: output, shape index: {}]  }
   0x1   :  { %s2103_s14 = smov 0  }
   0x2 LB: > { %s25_s15 = sadd.s32 1, %s2073_s13  ;;  %p1747_p0 = scmp.ge.s32.totalorder %s2077_s14, 1  ;;  %s2077_s14 = sphi %s2103_s14, %s13_s14   ;;  %s2073_s13 = sphi %s2101_s13, %s2350_s13   ;;  %s2069_s12 = sphi %s2099_s12, %s2349_s12  }
   0x3   : > { %p27_p1 = scmp.ge.s32.totalorder %s25_s15, 2  ;;  %p158_p2 = scmp.lt.s32.totalorder %s2077_s14, 3 }
   0x5   : > { %s2352_s15 = smov (%p27_p1, %s25_s15), 0  ;;  %p159_p3 = pnand %p1747_p0, %p158_p2 }
   0x6   : > { %p191_p4 = scmp.lt.s32.totalorder (!%p159_p3), %s2069_s12, 1 }
   0x7   : > { %162 = sbr.rel (%p159_p3) target bundleno = 262 (0x106), region = 32 }
   0xc   : > { %v1755_v0 = vld [vmem:[%s2346_s1 + $0x18] sm:$0xff]  ;;  %v213_v1 = vld [vmem:[%s2346_s1 + $0x8] sm:$0xff]  ;;  %v1754_v2 = vld [vmem:[%s2346_s1 + $0x10] sm:$0xff]  ;;  %s2354_s12 = smov (!%p191_p4, %s2069_s12), 1  ;;  %vm220_vm0 = vcmask 130048   ;;  %vm570_vm1 = vcmask 523264  }
   0xd   : > { %1919 = vmatprep.subr.mxu0 %v1755_v0  ;;  %1926 = vmatprep.subr.mxu1 %v213_v1  ;;  %v212_v3 = vld [vmem:[%s2346_s1] sm:$0xff]  ;;  %v1763_v4 = vld [vmem:[%s2346_s1 + $0x28] sm:$0xff]  ;;  %v1769_v5 = vld [vmem:[%s2346_s1 + $0x38] sm:$0xff]  ;;  %s1853_s28 = sshll.u32 %s2354_s12, 6 }
   0xe   : > { %1920 = vmatpush3.msra.mxu0 %v1755_v0  ;;  %1927 = vmatpush3.msra.mxu1 %v213_v1  ;;  %s198_s4 = scalar_lea.vmem %s2345_s0, %s1853_s28  ;;  %v1762_v10 = vld [vmem:[%s2346_s1 + $0x20] sm:$0xff]  ;;  %v1768_v11 = vld [vmem:[%s2346_s1 + $0x30] sm:$0xff]  ;;  %v1778_v14 = vld [vmem:[%s2346_s1 + $0x58] sm:$0xff]  ;;  %s2309_s21 = scalar_lea.vmem %s2348_s3, %s1853_s28 }
   0xf   : > { %1921 = vmatprep.subr.mxu0 %v1754_v2  ;;  %1928 = vmatprep.subr.mxu1 %v212_v3  ;;  %v2143_v6 = vld [vmem:[%s198_s4 + $0x10] sm:$0xff]  ;;  %v2145_v7 = vld [vmem:[%s198_s4] sm:$0xff]  ;;  %v2147_v8 = vld [vmem:[%s198_s4 + $0x18] sm:$0xff] }
  0x10   : > { %1922 = vmatpush3.msra.mxu0 %v1754_v2  ;;  %1929 = vmatpush3.msra.mxu1 %v212_v3  ;;  %v2153_v9 = vld [vmem:[%s198_s4 + $0x8] sm:$0xff]  ;;  %v2165_v12 = vld [vmem:[%s198_s4 + $0x20] sm:$0xff]  ;;  %v2167_v13 = vld [vmem:[%s198_s4 + $0x30] sm:$0xff] }
  0x11   : > { %1933 = vmatprep.subr.mxu0 %v1763_v4  ;;  %1940 = vmatprep.subr.mxu1 %v1769_v5  ;;  %v2172_v15 = vld [vmem:[%s198_s4 + $0x28] sm:$0xff]  ;;  %v2176_v16 = vld [vmem:[%s198_s4 + $0x38] sm:$0xff]  ;;  %v1777_v18 = vld [vmem:[%s2346_s1 + $0x50] sm:$0xff] }
  0x12   : > { %1923 = vmatprep.mubr.msk.f32.mxu0 %vm220_vm0, %v2143_v6  ;;  %1930 = vmatprep.mubr.msk.f32.mxu1 %vm220_vm0, %v2145_v7  ;;  %v1774_v17 = vld [vmem:[%s2346_s1 + $0x48] sm:$0xff]  ;;  %v1773_v19 = vld [vmem:[%s2346_s1 + $0x40] sm:$0xff]  ;;  %v1792_v21 = vld [vmem:[%s2346_s1 + $0x78] sm:$0xff] }
  0x13   : > { %1924 = vmatmul.mubr.msk.f32.vlgmr.msra.gmra.mxu0 %vm220_vm0, %v2147_v8  ;;  %1931 = vmatmul.mubr.msk.f32.vlgmr.msra.gmra.mxu1 %vm220_vm0, %v2153_v9  ;;  %v1786_v20 = vld [vmem:[%s2346_s1 + $0x68] sm:$0xff]  ;;  %v1785_v22 = vld [vmem:[%s2346_s1 + $0x60] sm:$0xff]  ;;  %v1791_v23 = vld [vmem:[%s2346_s1 + $0x70] sm:$0xff] }
  0x14   : > { %1934 = vmatpush3.msra.mxu0 %v1763_v4  ;;  %1941 = vmatpush3.msra.mxu1 %v1769_v5  ;;  %v1804_v24 = vld [vmem:[%s2346_s1 + $0x98] sm:$0xff]  ;;  %v1800_v25 = vld [vmem:[%s2346_s1 + $0x88] sm:$0xff]  ;;  %v1803_v26 = vld [vmem:[%s2346_s1 + $0x90] sm:$0xff] }
  0x15   : > { %1935 = vmatprep.subr.mxu0 %v1762_v10  ;;  %1942 = vmatprep.subr.mxu1 %v1768_v11  ;;  %v1799_v27 = vld [vmem:[%s2346_s1 + $0x80] sm:$0xff]  ;;  %v1812_v28 = vld [vmem:[%s2346_s1 + $0xa8] sm:$0xff]  ;;  %v1818_v29 = vld [vmem:[%s2346_s1 + $0xb8] sm:$0xff] }
  0x16   : > { %1936 = vmatpush3.msra.mxu0 %v1762_v10  ;;  %1937 = vmatprep.mubr.msk.f32.mxu0 %vm220_vm0, %v2165_v12  ;;  %v1811_v30 = vld [vmem:[%s2346_s1 + $0xa0] sm:$0xff]  ;;  %v1817_v31 = vld [vmem:[%s2346_s1 + $0xb0] sm:$0xff]  ;;  %v1830_v32 = vld [vmem:[%s2346_s1 + $0xd8] sm:$0xff] }
  0x17   : > { %1943 = vmatpush3.msra.mxu1 %v1768_v11  ;;  %1944 = vmatprep.mubr.msk.f32.mxu1 %vm220_vm0, %v2167_v13  ;;  %v1826_v33 = vld [vmem:[%s2346_s1 + $0xc8] sm:$0xff]  ;;  %v1829_v34 = vld [vmem:[%s2346_s1 + $0xd0] sm:$0xff]  ;;  %v1825_v35 = vld [vmem:[%s2346_s1 + $0xc0] sm:$0xff] }
  0x18   : > { %1947 = vmatprep.subr.mxu0 %v1778_v14  ;;  %1938 = vmatmul.mubr.msk.f32.vlgmr.msra.gmra.mxu0 %vm220_vm0, %v2172_v15  ;;  %v1838_v36 = vld [vmem:[%s2346_s1 + $0xe8] sm:$0xff]  ;;  %v1844_v37 = vld [vmem:[%s2346_s1 + $0xf8] sm:$0xff]  ;;  %v1837_v38 = vld [vmem:[%s2346_s1 + $0xe0] sm:$0xff] }
  0x19   : > { %1945 = vmatmul.mubr.msk.f32.vlgmr.msra.gmra.mxu1 %vm220_vm0, %v2176_v16  ;;  %1948 = vmatpush3.msra.mxu0 %v1778_v14  ;;  %v1843_v39 = vld [vmem:[%s2346_s1 + $0xf0] sm:$0xff]  ;;  %v1772_v49 = vld [vmem:[%s2347_s2] ss:$0 sm:$0xff]  ;;  %v1796_v2 = vld [vmem:[%s2347_s2 + $0x1] ss:$0 sm:$0xff] }
  0x1a   : > { %1954 = vmatprep.subr.mxu1 %v1774_v17  ;;  %1949 = vmatprep.subr.mxu0 %v1777_v18 }
  0x1b   : > { %1955 = vmatpush3.msra.mxu1 %v1774_v17  ;;  %1950 = vmatpush3.msra.mxu0 %v1777_v18 }
  0x1c   : > { %1956 = vmatprep.subr.mxu1 %v1773_v19  ;;  %1951 = vmatprep.mubr.msk.f32.mxu0 %vm220_vm0, %v2143_v6 }
  0x1d   : > { %1957 = vmatpush3.msra.mxu1 %v1773_v19  ;;  %1958 = vmatprep.mubr.msk.f32.mxu1 %vm220_vm0, %v2145_v7  ;;  %v1822_v19 = vld [vmem:[%s2347_s2 + $0x2] ss:$0 sm:$0xff] }
  0x1e   : > { %1961 = vmatprep.subr.mxu0 %v1786_v20  ;;  %1952 = vmatmul.mubr.msk.f32.vlgmr.msra.gmra.mxu0 %vm220_vm0, %v2147_v8 }
  0x1f   : > { %1959 = vmatmul.mubr.msk.f32.vlgmr.msra.gmra.mxu1 %vm220_vm0, %v2153_v9  ;;  %1962 = vmatpush3.msra.mxu0 %v1786_v20 }
  0x20   : > { %1968 = vmatprep.subr.mxu1 %v1792_v21  ;;  %1963 = vmatprep.subr.mxu0 %v1785_v22 }
  0x21   : > { %1969 = vmatpush3.msra.mxu1 %v1792_v21  ;;  %1964 = vmatpush3.msra.mxu0 %v1785_v22 }
  0x22   : > { %1970 = vmatprep.subr.mxu1 %v1791_v23  ;;  %1965 = vmatprep.mubr.msk.f32.mxu0 %vm220_vm0, %v2165_v12 }
  0x23   : > { %1971 = vmatpush3.msra.mxu1 %v1791_v23  ;;  %1972 = vmatprep.mubr.msk.f32.mxu1 %vm220_vm0, %v2167_v13 }
  0x24   : > { %1975 = vmatprep.subr.mxu0 %v1804_v24  ;;  %1966 = vmatmul.mubr.msk.f32.vlgmr.msra.gmra.mxu0 %vm220_vm0, %v2172_v15 }
  0x25   : > { %1973 = vmatmul.mubr.msk.f32.vlgmr.msra.gmra.mxu1 %vm220_vm0, %v2176_v16  ;;  %1976 = vmatpush3.msra.mxu0 %v1804_v24 }
  0x26   : > { %1982 = vmatprep.subr.mxu1 %v1800_v25  ;;  %1977 = vmatprep.subr.mxu0 %v1803_v26 }
  0x27   : > { %1983 = vmatpush3.msra.mxu1 %v1800_v25  ;;  %1978 = vmatpush3.msra.mxu0 %v1803_v26 }
  0x28   : > { %1984 = vmatprep.subr.mxu1 %v1799_v27  ;;  %1979 = vmatprep.mubr.msk.f32.mxu0 %vm220_vm0, %v2143_v6 }
  0x29   : > { %1985 = vmatpush3.msra.mxu1 %v1799_v27  ;;  %1986 = vmatprep.mubr.msk.f32.mxu1 %vm220_vm0, %v2145_v7 }
  0x2a   : > { %1989 = vmatprep.subr.mxu0 %v1812_v28  ;;  %1980 = vmatmul.mubr.msk.f32.vlgmr.msra.gmra.mxu0 %vm220_vm0, %v2147_v8 }
  0x2b   : > { %1987 = vmatmul.mubr.msk.f32.vlgmr.msra.gmra.mxu1 %vm220_vm0, %v2153_v9  ;;  %1990 = vmatpush3.msra.mxu0 %v1812_v28 }
  0x2c   : > { %1996 = vmatprep.subr.mxu1 %v1818_v29  ;;  %1991 = vmatprep.subr.mxu0 %v1811_v30 }
  0x2d   : > { %1997 = vmatpush3.msra.mxu1 %v1818_v29  ;;  %1992 = vmatpush3.msra.mxu0 %v1811_v30 }
  0x2e   : > { %1998 = vmatprep.subr.mxu1 %v1817_v31  ;;  %1993 = vmatprep.mubr.msk.f32.mxu0 %vm220_vm0, %v2165_v12 }
  0x2f   : > { %1999 = vmatpush3.msra.mxu1 %v1817_v31  ;;  %2000 = vmatprep.mubr.msk.f32.mxu1 %vm220_vm0, %v2167_v13 }
  0x30   : > { %2003 = vmatprep.subr.mxu0 %v1830_v32  ;;  %1994 = vmatmul.mubr.msk.f32.vlgmr.msra.gmra.mxu0 %vm220_vm0, %v2172_v15 }
  0x31   : > { %2001 = vmatmul.mubr.msk.f32.vlgmr.msra.gmra.mxu1 %vm220_vm0, %v2176_v16  ;;  %2004 = vmatpush3.msra.mxu0 %v1830_v32 }
  0x32   : > { %2010 = vmatprep.subr.mxu1 %v1826_v33  ;;  %2005 = vmatprep.subr.mxu0 %v1829_v34 }
  0x33   : > { %2011 = vmatpush3.msra.mxu1 %v1826_v33  ;;  %2006 = vmatpush3.msra.mxu0 %v1829_v34 }
  0x34   : > { %2012 = vmatprep.subr.mxu1 %v1825_v35  ;;  %2007 = vmatprep.mubr.msk.f32.mxu0 %vm220_vm0, %v2143_v6 }
  0x35   : > { %2013 = vmatpush3.msra.mxu1 %v1825_v35  ;;  %2014 = vmatprep.mubr.msk.f32.mxu1 %vm220_vm0, %v2145_v7 }
  0x36   : > { %2017 = vmatprep.subr.mxu0 %v1838_v36  ;;  %2008 = vmatmul.mubr.msk.f32.vlgmr.msra.gmra.mxu0 %vm220_vm0, %v2147_v8 }
  0x37   : > { %2015 = vmatmul.mubr.msk.f32.vlgmr.msra.gmra.mxu1 %vm220_vm0, %v2153_v9  ;;  %2018 = vmatpush3.msra.mxu0 %v1838_v36  ;;  %v1848_v36 = vld [vmem:[%s2347_s2 + $0x3] ss:$0 sm:$0xff] }
  0x38   : > { %2024 = vmatprep.subr.mxu1 %v1844_v37  ;;  %2019 = vmatprep.subr.mxu0 %v1837_v38 }
  0x39   : > { %2025 = vmatpush3.msra.mxu1 %v1844_v37  ;;  %2020 = vmatpush3.msra.mxu0 %v1837_v38 }
  0x3a   : > { %2026 = vmatprep.subr.mxu1 %v1843_v39  ;;  %2021 = vmatprep.mubr.msk.f32.mxu0 %vm220_vm0, %v2165_v12 }
  0x3b   : > { %2027 = vmatpush3.msra.mxu1 %v1843_v39  ;;  %2028 = vmatprep.mubr.msk.f32.mxu1 %vm220_vm0, %v2167_v13 }
  0x3c   : > { %2022 = vmatmul.mubr.msk.f32.vlgmr.msra.gmra.mxu0 %vm220_vm0, %v2172_v15  ;;  %2029 = vmatmul.mubr.msk.f32.vlgmr.msra.gmra.mxu1 %vm220_vm0, %v2176_v16 }
  0xd3   : > { %v1925_v40 = vpop.f32.mrf.mxu0  ;;  %v1932_v41 = vpop.f32.mrf.mxu1 }
  0xd4   : > { %v380_v44 = vadd.f32 %v1932_v41, %v1925_v40 }
  0xd5   : > { %v293_v42 = vpop.f32.mrf.mxu0  ;;  %v374_v43 = vpop.f32.mrf.mxu1 }
  0xd6   : > { %v375_v46 = vadd.f32 %v374_v43, %v293_v42 }
  0xd8   : > { %v1939_v45 = vpop.f32.mrf.mxu0 }
  0xd9   : > { %v471_v47 = vadd.f32 %v1939_v45, %v380_v44  ;;  %v1946_v48 = vpop.f32.mrf.mxu1 }
  0xda   : > { %v461_v50 = vpop.f32.mrf.mxu0 }
  0xdb   : > { %v560_v51 = vadd.f32 %v1946_v48, %v471_v47  ;;  %v470_v52 = vadd.f32 %v461_v50, %v375_v46  ;;  %v550_v53 = vpop.f32.mrf.mxu1 }
  0xdd   : > { %v569_v54 = vadd.f32 %v1772_v49, %v560_v51  ;;  %v559_v55 = vadd.f32 %v550_v53, %v470_v52 }
  0xde   : > { %v1953_v56 = vpop.f32.mrf.mxu0 }
  0xdf   : > { %572 = vst.msk [vmem:[%s2309_s21 + $0x8] sm:$0xff] %vm570_vm1, %v569_v54  ;;  %v568_v57 = vadd.f32 %v1772_v49, %v559_v55  ;;  %v1960_v58 = vpop.f32.mrf.mxu1 }
  0xe0   : > { %v655_v59 = vpop.f32.mrf.mxu0  ;;  %v742_v61 = vadd.f32 %v1960_v58, %v1953_v56 }
  0xe1   : > { %571 = vst.msk [vmem:[%s2309_s21] sm:$0xff] %vm570_vm1, %v568_v57  ;;  %v736_v60 = vpop.f32.mrf.mxu1 }
  0xe2   : > { %v737_v63 = vadd.f32 %v736_v60, %v655_v59 }
  0xe4   : > { %v1967_v62 = vpop.f32.mrf.mxu0 }
  0xe5   : > { %v832_v0 = vadd.f32 %v1967_v62, %v742_v61  ;;  %v1974_v1 = vpop.f32.mrf.mxu1 }
  0xe6   : > { %v822_v3 = vpop.f32.mrf.mxu0 }
  0xe7   : > { %v920_v4 = vadd.f32 %v1974_v1, %v832_v0  ;;  %v831_v5 = vadd.f32 %v822_v3, %v737_v63  ;;  %v910_v6 = vpop.f32.mrf.mxu1 }
  0xe9   : > { %v930_v7 = vadd.f32 %v1796_v2, %v920_v4  ;;  %v919_v8 = vadd.f32 %v910_v6, %v831_v5 }
  0xea   : > { %v1981_v9 = vpop.f32.mrf.mxu0 }
  0xeb   : > { %1798 = vst.msk [vmem:[%s2309_s21 + $0x18] sm:$0xff] %vm570_vm1, %v930_v7  ;;  %v929_v10 = vadd.f32 %v1796_v2, %v919_v8  ;;  %v1988_v11 = vpop.f32.mrf.mxu1 }
  0xec   : > { %v1016_v12 = vpop.f32.mrf.mxu0  ;;  %v1103_v14 = vadd.f32 %v1988_v11, %v1981_v9 }
  0xed   : > { %1797 = vst.msk [vmem:[%s2309_s21 + $0x10] sm:$0xff] %vm570_vm1, %v929_v10  ;;  %v1097_v13 = vpop.f32.mrf.mxu1 }
  0xee   : > { %v1098_v16 = vadd.f32 %v1097_v13, %v1016_v12 }
  0xf0   : > { %v1995_v15 = vpop.f32.mrf.mxu0 }
  0xf1   : > { %v1193_v17 = vadd.f32 %v1995_v15, %v1103_v14  ;;  %v2002_v18 = vpop.f32.mrf.mxu1 }
  0xf2   : > { %v1183_v20 = vpop.f32.mrf.mxu0 }
  0xf3   : > { %v1281_v21 = vadd.f32 %v2002_v18, %v1193_v17  ;;  %v1192_v22 = vadd.f32 %v1183_v20, %v1098_v16  ;;  %v1271_v23 = vpop.f32.mrf.mxu1 }
  0xf5   : > { %v1291_v24 = vadd.f32 %v1822_v19, %v1281_v21  ;;  %v1280_v25 = vadd.f32 %v1271_v23, %v1192_v22 }
  0xf6   : > { %v2009_v26 = vpop.f32.mrf.mxu0 }
  0xf7   : > { %1824 = vst.msk [vmem:[%s2309_s21 + $0x28] sm:$0xff] %vm570_vm1, %v1291_v24  ;;  %v1290_v27 = vadd.f32 %v1822_v19, %v1280_v25  ;;  %v2016_v28 = vpop.f32.mrf.mxu1 }
  0xf8   : > { %v1377_v29 = vpop.f32.mrf.mxu0  ;;  %v1464_v31 = vadd.f32 %v2016_v28, %v2009_v26 }
  0xf9   : > { %1823 = vst.msk [vmem:[%s2309_s21 + $0x20] sm:$0xff] %vm570_vm1, %v1290_v27  ;;  %v1458_v30 = vpop.f32.mrf.mxu1 }
  0xfa   : > { %v1459_v34 = vadd.f32 %v1458_v30, %v1377_v29 }
  0xfc   : > { %v2023_v32 = vpop.f32.mrf.mxu0  ;;  %v2030_v33 = vpop.f32.mrf.mxu1 }
  0xfd   : > { %v1554_v35 = vadd.f32 %v2023_v32, %v1464_v31 }
  0xfe   : > { %v1544_v37 = vpop.f32.mrf.mxu0  ;;  %v1632_v40 = vpop.f32.mrf.mxu1 }
  0xff   : > { %v1642_v38 = vadd.f32 %v2030_v33, %v1554_v35  ;;  %v1553_v39 = vadd.f32 %v1544_v37, %v1459_v34 }
 0x101   : > { %v1652_v41 = vadd.f32 %v1848_v36, %v1642_v38  ;;  %v1641_v42 = vadd.f32 %v1632_v40, %v1553_v39 }
 0x103   : > { %1850 = vst.msk [vmem:[%s2309_s21 + $0x38] sm:$0xff] %vm570_vm1, %v1652_v41  ;;  %v1651_v43 = vadd.f32 %v1848_v36, %v1641_v42 }
 0x105   : > { %1849 = vst.msk [vmem:[%s2309_s21 + $0x30] sm:$0xff] %vm570_vm1, %v1651_v43 }
 0x106 PF: > { %s13_s14 = sadd.s32 1, %s2077_s14   ;;  %s2349_s12 = smov %s2073_s13 }
 0x107   : > { %p10_p5 = scmp.ge.s32.totalorder %s13_s14, 4   ;;  %s2350_s13 = smov %s2352_s15 }
 0x109   :  { %12 = sbr.rel (!%p10_p5) target bundleno = 2 (0x2), region = 86 }

</bundles_post_ra>
